<compile_context>
chip_gen: v6e
topology: v6e:2x2x1
jax: 0.10.0
libtpu: 0.0.40
codegen_flags: <defaults>
</compile_context>

<pallas_src>
import functools

import jax
import jax.numpy as jnp
from jax import lax
from jax.experimental import pallas as pl
from jax.experimental.pallas import tpu as pltpu


def _mutual_attention_kernel(x_ref, y_ref, wq_ref, wk_ref, wv_ref, wo_ref,
                             scale_ref, bias_ref, o_ref, *, bt):
    # x_ref / y_ref: (bt, C, HWp) at the caller's dtype (f32 or bf16).
    wq = wq_ref[...]            # (C, C) bf16
    wk = wk_ref[...]            # (C, C) bf16
    wv = wv_ref[...]            # (C, C) bf16
    wo = wo_ref[...]            # (C, C) bf16
    scale = scale_ref[...]      # (C, 1) f32 : per-row (per-head) temperature
    bias = bias_ref[...]        # (C, C) f32 : 0 on head-diagonal blocks, -1e30 off
    eps2 = jnp.float32(1e-24)   # matches F.normalize eps=1e-12 via rsqrt(max(ss, eps^2))

    def body(bi, carry):
        # Cast to bf16 inside the kernel (VMEM-local) — no standalone HBM convert pass.
        x = x_ref[bi].astype(jnp.bfloat16)                               # (C, HWp)
        y = y_ref[bi].astype(jnp.bfloat16)                               # (C, HWp)

        # 1x1 convs == channel-mixing matmuls (bf16 operands, f32 accumulation).
        q = jnp.dot(wq, x, preferred_element_type=jnp.float32)           # (C, HWp) f32
        k = jnp.dot(wk, y, preferred_element_type=jnp.float32)           # (C, HWp) f32

        # L2-normalize along spatial axis; temperature folded into the q scale.
        inv_q = lax.rsqrt(jnp.maximum(jnp.sum(q * q, axis=-1, keepdims=True), eps2)) * scale
        inv_k = lax.rsqrt(jnp.maximum(jnp.sum(k * k, axis=-1, keepdims=True), eps2))
        qn = (q * inv_q).astype(jnp.bfloat16)                            # (C, HWp) bf16
        kn = (k * inv_k).astype(jnp.bfloat16)                            # (C, HWp) bf16

        # All-heads channel-channel scores in one MXU matmul; per-head structure
        # enforced by the precomputed block-diagonal additive bias.
        s = lax.dot_general(qn, kn, dimension_numbers=(((1,), (1,)), ((), ())),
                            preferred_element_type=jnp.float32) + bias   # (C, C) f32

        # Per-head softmax over the last axis (masked entries -> 0).
        s = s - jnp.max(s, axis=-1, keepdims=True)
        e = jnp.exp(s)
        a = (e * pl.reciprocal(jnp.sum(e, axis=-1, keepdims=True),
                               approx=True)).astype(jnp.bfloat16)        # (C, C) bf16

        # Fold project_out into the apply: P = Wo @ A (tiny), out = P @ v.
        p = jnp.dot(wo, a, preferred_element_type=jnp.float32).astype(jnp.bfloat16)
        # v is computed late so the k f32 slab is dead before v is live (VMEM peak).
        vb = jnp.dot(wv, y, preferred_element_type=jnp.float32).astype(jnp.bfloat16)
        o_ref[bi] = jnp.dot(p, vb, preferred_element_type=jnp.float32).astype(o_ref.dtype)
        return carry

    lax.fori_loop(0, bt, body, 0, unroll=(bt <= 2))


def mutual_attention(x, y, wq, wk, wv, wo, temperature, *, num_heads,
                     out_dtype=jnp.bfloat16):
    """x, y: (B, C, H, W). Weights: (C, C) (1x1 conv, bias=False).
    temperature: (num_heads,) per-head scalars. Output dtype defaults to bf16
    (mem-bound kernel); pass out_dtype=jnp.float32 for exact dtype parity."""
    b, c, hgt, wid = x.shape
    assert x.shape == y.shape, "feature maps must have equal shapes"
    assert c % num_heads == 0
    head_dim = c // num_heads

    hw = hgt * wid
    hw_p = ((hw + 127) // 128) * 128               # lane-dense spatial axis

    # Feed inputs at their stored dtype; cast to bf16 inside the kernel.
    if x.dtype not in (jnp.float32, jnp.bfloat16):
        x = x.astype(jnp.float32)
        y = y.astype(jnp.float32)
    x2 = x.reshape(b, c, hw)
    y2 = y.reshape(b, c, hw)
    if hw_p != hw:
        # Zero-padded columns contribute 0 to norms/scores and produce 0 output
        # columns that are sliced off.
        # TODO(synk): for hw not a multiple of 128, or very large C*HW on v7x
        # (64 MiB VMEM), switch to an HW-tiled two-pass kernel instead of this
        # extra HBM pad pass.
        pad = hw_p - hw
        x2 = jnp.pad(x2, ((0, 0), (0, 0), (0, pad)))
        y2 = jnp.pad(y2, ((0, 0), (0, 0), (0, pad)))

    wq_bf = wq.astype(jnp.bfloat16)
    wk_bf = wk.astype(jnp.bfloat16)
    wv_bf = wv.astype(jnp.bfloat16)
    wo_bf = wo.astype(jnp.bfloat16)

    # Per-row temperature (folded into q scale) and block-diagonal additive mask.
    scale = jnp.repeat(temperature.astype(jnp.float32).reshape(num_heads),
                       head_dim).reshape(c, 1)
    head_ids = jnp.arange(c, dtype=jnp.int32) // head_dim
    bias = jnp.where(head_ids[:, None] == head_ids[None, :],
                     jnp.float32(0.0), jnp.float32(-1e30))

    in_itemsize = jnp.dtype(x2.dtype).itemsize
    out_itemsize = jnp.dtype(out_dtype).itemsize

    # Generation-aware VMEM cap (~0.8x per-core capacity), explicit live-buffer sum.
    try:
        cap = int(0.8 * pltpu.get_tpu_info().vmem_capacity_bytes)
    except Exception:
        cap = 48 * 1024 * 1024
    cap = max(cap, 24 * 1024 * 1024)

    per_elem_io = c * hw_p * (2 * 2 * in_itemsize + 2 * out_itemsize)  # x,y,out dbl-buffered
    fixed = (14 * c * hw_p          # peak per-element f32/bf16 working slabs
             + 8 * 2 * c * c        # double-buffered bf16 weights (Wq,Wk,Wv,Wo)
             + 6 * c * c * 4        # (C,C) mask / scores / attention temporaries
             + (2 << 20))           # slack
    bt = max(1, min(8, b, (cap - fixed) // max(per_elem_io, 1)))
    while b % bt:                   # bt must divide B
        bt -= 1
    bt = int(bt)

    vmem_limit = int(min(cap, max(16 << 20, bt * per_elem_io + fixed)))

    kernel = functools.partial(_mutual_attention_kernel, bt=bt)

    out = pl.pallas_call(
        kernel,
        out_shape=jax.ShapeDtypeStruct((b, c, hw_p), out_dtype),
        grid_spec=pltpu.PrefetchScalarGridSpec(
            num_scalar_prefetch=0,
            grid=(b // bt,),
            in_specs=[
                pl.BlockSpec((bt, c, hw_p), lambda i: (i, 0, 0)),   # x (native dtype)
                pl.BlockSpec((bt, c, hw_p), lambda i: (i, 0, 0)),   # y (native dtype)
                pl.BlockSpec((c, c), lambda i: (0, 0)),             # wq bf16
                pl.BlockSpec((c, c), lambda i: (0, 0)),             # wk bf16
                pl.BlockSpec((c, c), lambda i: (0, 0)),             # wv bf16
                pl.BlockSpec((c, c), lambda i: (0, 0)),             # wo bf16
                pl.BlockSpec((c, 1), lambda i: (0, 0)),             # per-row temperature
                pl.BlockSpec((c, c), lambda i: (0, 0)),             # block-diag mask bias
            ],
            out_specs=pl.BlockSpec((bt, c, hw_p), lambda i: (i, 0, 0)),
        ),
        compiler_params=pltpu.CompilerParams(
            dimension_semantics=("parallel",),
            vmem_limit_bytes=vmem_limit),
    )(x2, y2, wq_bf, wk_bf, wv_bf, wo_bf, scale, bias)

    if hw_p != hw:
        out = out[:, :, :hw]
    return out.reshape(b, c, hgt, wid)


def _reference(x, y, wq, wk, wv, wo, temperature, *, num_heads):
    """Pure-JAX f32 reference mirroring the PyTorch forward."""
    b, c, hgt, wid = x.shape
    hw = hgt * wid
    hd = c // num_heads
    x2 = x.reshape(b, c, hw)
    y2 = y.reshape(b, c, hw)
    q = jnp.einsum('oc,bcs->bos', wq, x2).reshape(b, num_heads, hd, hw)
    k = jnp.einsum('oc,bcs->bos', wk, y2).reshape(b, num_heads, hd, hw)
    v = jnp.einsum('oc,bcs->bos', wv, y2).reshape(b, num_heads, hd, hw)
    qn = q / jnp.maximum(jnp.linalg.norm(q, axis=-1, keepdims=True), 1e-12)
    kn = k / jnp.maximum(jnp.linalg.norm(k, axis=-1, keepdims=True), 1e-12)
    attn = jnp.einsum('bhcs,bhds->bhcd', qn, kn)
    attn = attn * temperature[None, :, None, None]
    attn = jax.nn.softmax(attn, axis=-1)
    out = jnp.einsum('bhcd,bhds->bhcs', attn, v).reshape(b, c, hw)
    out = jnp.einsum('oc,bcs->bos', wo, out)
    return out.reshape(b, c, hgt, wid)


if __name__ == "__main__":
    B, DIM, H, W = 2, 32, 16, 16
    NUM_HEADS = 4

    key = jax.random.PRNGKey(0)
    kx, ky, k1, k2, k3, k4 = jax.random.split(key, 6)

    x = jax.random.normal(kx, (B, DIM, H, W), dtype=jnp.float32)
    y = jax.random.normal(ky, (B, DIM, H, W), dtype=jnp.float32)

    # 1x1 conv weights (bias=False) -> (out_ch, in_ch) matrices; deterministic init.
    wq = 0.1 * jax.random.normal(k1, (DIM, DIM), dtype=jnp.float32)
    wk = 0.1 * jax.random.normal(k2, (DIM, DIM), dtype=jnp.float32)
    wv = 0.1 * jax.random.normal(k3, (DIM, DIM), dtype=jnp.float32)
    wo = 0.1 * jax.random.normal(k4, (DIM, DIM), dtype=jnp.float32)
    # nn.Parameter(torch.ones(num_heads, 1, 1)) -> per-head scalar temperatures.
    temperature = jnp.ones((NUM_HEADS,), dtype=jnp.float32)

    out = mutual_attention(x, y, wq, wk, wv, wo, temperature,
                           num_heads=NUM_HEADS)
    out = jax.block_until_ready(out)

    ref = _reference(x, y, wq, wk, wv, wo, temperature, num_heads=NUM_HEADS)
    assert out.shape == (B, DIM, H, W)
    # bf16 MXU operands + bf16 output shift results at the ~1e-3..1e-2 level
    # vs the f32 reference.
    assert jnp.allclose(out.astype(jnp.float32), ref, atol=3e-2, rtol=3e-2), \
        "mismatch vs reference"

    print("KERNEL_OK")
</pallas_src>

<mosaic_0001>
module attributes {stable_mosaic.version = 11 : i64} {
  func.func @_mutual_attention_kernel(%arg0: i32, %arg1: memref<2x32x256xf32, #tpu.memory_space<vmem>>, %arg2: memref<2x32x256xf32, #tpu.memory_space<vmem>>, %arg3: memref<32x32xbf16, #tpu.memory_space<vmem>>, %arg4: memref<32x32xbf16, #tpu.memory_space<vmem>>, %arg5: memref<32x32xbf16, #tpu.memory_space<vmem>>, %arg6: memref<32x32xbf16, #tpu.memory_space<vmem>>, %arg7: memref<32x1xf32, #tpu.memory_space<vmem>>, %arg8: memref<32x32xf32, #tpu.memory_space<vmem>>, %arg9: memref<2x32x256xbf16, #tpu.memory_space<vmem>>) attributes {dimension_semantics = [#tpu.dimension_semantics<parallel>], iteration_bounds = array<i64: 1>, scalar_prefetch = 0 : i64, scratch_operands = 0 : i64, tpu.core_type = #tpu.core_type<tc>, window_params = [{transform_indices = @transform_0, window_bounds = array<i64: 2, 32, 256>}, {transform_indices = @transform_1, window_bounds = array<i64: 2, 32, 256>}, {pipeline_mode = #tpu.pipeline_mode<synchronous>, transform_indices = @transform_2, window_bounds = array<i64: 32, 32>}, {pipeline_mode = #tpu.pipeline_mode<synchronous>, transform_indices = @transform_3, window_bounds = array<i64: 32, 32>}, {pipeline_mode = #tpu.pipeline_mode<synchronous>, transform_indices = @transform_4, window_bounds = array<i64: 32, 32>}, {pipeline_mode = #tpu.pipeline_mode<synchronous>, transform_indices = @transform_5, window_bounds = array<i64: 32, 32>}, {pipeline_mode = #tpu.pipeline_mode<synchronous>, transform_indices = @transform_6, window_bounds = array<i64: 32, 1>}, {pipeline_mode = #tpu.pipeline_mode<synchronous>, transform_indices = @transform_7, window_bounds = array<i64: 32, 32>}, {transform_indices = @transform_8, window_bounds = array<i64: 2, 32, 256>}]} {
    %c0 = arith.constant 0 : index
    %c0_0 = arith.constant 0 : index
    %0 = vector.load %arg3[%c0, %c0_0] : memref<32x32xbf16, #tpu.memory_space<vmem>>, vector<32x32xbf16>
    %c0_1 = arith.constant 0 : index
    %c0_2 = arith.constant 0 : index
    %1 = vector.load %arg4[%c0_1, %c0_2] : memref<32x32xbf16, #tpu.memory_space<vmem>>, vector<32x32xbf16>
    %c0_3 = arith.constant 0 : index
    %c0_4 = arith.constant 0 : index
    %2 = vector.load %arg5[%c0_3, %c0_4] : memref<32x32xbf16, #tpu.memory_space<vmem>>, vector<32x32xbf16>
    %c0_5 = arith.constant 0 : index
    %c0_6 = arith.constant 0 : index
    %3 = vector.load %arg6[%c0_5, %c0_6] : memref<32x32xbf16, #tpu.memory_space<vmem>>, vector<32x32xbf16>
    %c0_7 = arith.constant 0 : index
    %c0_8 = arith.constant 0 : index
    %4 = vector.load %arg7[%c0_7, %c0_8] : memref<32x1xf32, #tpu.memory_space<vmem>>, vector<32x1xf32>
    %c0_9 = arith.constant 0 : index
    %c0_10 = arith.constant 0 : index
    %5 = vector.load %arg8[%c0_9, %c0_10] : memref<32x32xf32, #tpu.memory_space<vmem>>, vector<32x32xf32>
    %cst = arith.constant 1.000000e-24 : f32
    %c0_i32 = arith.constant 0 : i32
    %6 = arith.index_cast %c0_i32 : i32 to index
    %c0_11 = arith.constant 0 : index
    %c0_12 = arith.constant 0 : index
    %7 = vector.load %arg1[%6, %c0_11, %c0_12] : memref<2x32x256xf32, #tpu.memory_space<vmem>>, vector<1x32x256xf32>
    %8 = vector.shape_cast %7 : vector<1x32x256xf32> to vector<32x256xf32>
    %9 = arith.truncf %8 : vector<32x256xf32> to vector<32x256xbf16>
    %10 = arith.index_cast %c0_i32 : i32 to index
    %c0_13 = arith.constant 0 : index
    %c0_14 = arith.constant 0 : index
    %11 = vector.load %arg2[%10, %c0_13, %c0_14] : memref<2x32x256xf32, #tpu.memory_space<vmem>>, vector<1x32x256xf32>
    %12 = vector.shape_cast %11 : vector<1x32x256xf32> to vector<32x256xf32>
    %13 = arith.truncf %12 : vector<32x256xf32> to vector<32x256xbf16>
    %cst_15 = arith.constant dense<0.000000e+00> : vector<32x256xf32>
    %14 = tpu.matmul %0, %9, %cst_15 {dimension_numbers = #tpu.dot_dimension_numbers<[1], [0], [0], [1], [0, 0, 1, 1], [], []>} : vector<32x32xbf16>, vector<32x256xbf16>, vector<32x256xf32> -> vector<32x256xf32>
    %cst_16 = arith.constant dense<0.000000e+00> : vector<32x256xf32>
    %15 = tpu.matmul %1, %13, %cst_16 {dimension_numbers = #tpu.dot_dimension_numbers<[1], [0], [0], [1], [0, 0, 1, 1], [], []>} : vector<32x32xbf16>, vector<32x256xbf16>, vector<32x256xf32> -> vector<32x256xf32>
    %16 = arith.mulf %14, %14 : vector<32x256xf32>
    %cst_17 = arith.constant dense<0.000000e+00> : vector<32xf32>
    %17 = vector.multi_reduction <add>, %16, %cst_17 [1] : vector<32x256xf32> to vector<32xf32>
    %18 = vector.shape_cast %17 : vector<32xf32> to vector<32x1xf32>
    %19 = vector.broadcast %cst : f32 to vector<32x1xf32>
    %20 = arith.maximumf %18, %19 : vector<32x1xf32>
    %21 = math.rsqrt %20 : vector<32x1xf32>
    %22 = arith.mulf %21, %4 : vector<32x1xf32>
    %23 = arith.mulf %15, %15 : vector<32x256xf32>
    %cst_18 = arith.constant dense<0.000000e+00> : vector<32xf32>
    %24 = vector.multi_reduction <add>, %23, %cst_18 [1] : vector<32x256xf32> to vector<32xf32>
    %25 = vector.shape_cast %24 : vector<32xf32> to vector<32x1xf32>
    %26 = vector.broadcast %cst : f32 to vector<32x1xf32>
    %27 = arith.maximumf %25, %26 : vector<32x1xf32>
    %28 = math.rsqrt %27 : vector<32x1xf32>
    %29 = vector.broadcast %22 : vector<32x1xf32> to vector<32x256xf32>
    %30 = arith.mulf %14, %29 : vector<32x256xf32>
    %31 = arith.truncf %30 : vector<32x256xf32> to vector<32x256xbf16>
    %32 = vector.broadcast %28 : vector<32x1xf32> to vector<32x256xf32>
    %33 = arith.mulf %15, %32 : vector<32x256xf32>
    %34 = arith.truncf %33 : vector<32x256xf32> to vector<32x256xbf16>
    %cst_19 = arith.constant dense<0.000000e+00> : vector<32x32xf32>
    %35 = tpu.matmul %31, %34, %cst_19 {dimension_numbers = #tpu.dot_dimension_numbers<[1], [1], [0], [0], [0, 0, 1, 0], [], []>} : vector<32x256xbf16>, vector<32x256xbf16>, vector<32x32xf32> -> vector<32x32xf32>
    %36 = arith.addf %35, %5 : vector<32x32xf32>
    %cst_20 = arith.constant dense<0xFF800000> : vector<32xf32>
    %37 = vector.multi_reduction <maximumf>, %36, %cst_20 [1] : vector<32x32xf32> to vector<32xf32>
    %38 = vector.shape_cast %37 : vector<32xf32> to vector<32x1xf32>
    %39 = vector.broadcast %38 : vector<32x1xf32> to vector<32x32xf32>
    %40 = arith.subf %36, %39 : vector<32x32xf32>
    %41 = math.exp %40 : vector<32x32xf32>
    %cst_21 = arith.constant dense<0.000000e+00> : vector<32xf32>
    %42 = vector.multi_reduction <add>, %41, %cst_21 [1] : vector<32x32xf32> to vector<32xf32>
    %43 = vector.shape_cast %42 : vector<32xf32> to vector<32x1xf32>
    %44 = tpu.reciprocal %43 {approx = true} : vector<32x1xf32> -> vector<32x1xf32>
    %45 = vector.broadcast %44 : vector<32x1xf32> to vector<32x32xf32>
    %46 = arith.mulf %41, %45 : vector<32x32xf32>
    %47 = arith.truncf %46 : vector<32x32xf32> to vector<32x32xbf16>
    %cst_22 = arith.constant dense<0.000000e+00> : vector<32x32xf32>
    %48 = tpu.matmul %3, %47, %cst_22 {dimension_numbers = #tpu.dot_dimension_numbers<[1], [0], [0], [1], [0, 0, 1, 1], [], []>} : vector<32x32xbf16>, vector<32x32xbf16>, vector<32x32xf32> -> vector<32x32xf32>
    %49 = arith.truncf %48 : vector<32x32xf32> to vector<32x32xbf16>
    %cst_23 = arith.constant dense<0.000000e+00> : vector<32x256xf32>
    %50 = tpu.matmul %2, %13, %cst_23 {dimension_numbers = #tpu.dot_dimension_numbers<[1], [0], [0], [1], [0, 0, 1, 1], [], []>} : vector<32x32xbf16>, vector<32x256xbf16>, vector<32x256xf32> -> vector<32x256xf32>
    %51 = arith.truncf %50 : vector<32x256xf32> to vector<32x256xbf16>
    %cst_24 = arith.constant dense<0.000000e+00> : vector<32x256xf32>
    %52 = tpu.matmul %49, %51, %cst_24 {dimension_numbers = #tpu.dot_dimension_numbers<[1], [0], [0], [1], [0, 0, 1, 1], [], []>} : vector<32x32xbf16>, vector<32x256xbf16>, vector<32x256xf32> -> vector<32x256xf32>
    %53 = arith.truncf %52 : vector<32x256xf32> to vector<32x256xbf16>
    %54 = arith.index_cast %c0_i32 : i32 to index
    %c0_25 = arith.constant 0 : index
    %c0_26 = arith.constant 0 : index
    %55 = vector.load %arg9[%54, %c0_25, %c0_26] : memref<2x32x256xbf16, #tpu.memory_space<vmem>>, vector<1x32x256xbf16>
    %56 = vector.shape_cast %55 : vector<1x32x256xbf16> to vector<32x256xbf16>
    %57 = vector.shape_cast %53 : vector<32x256xbf16> to vector<1x32x256xbf16>
    tpu.vector_store %arg9[%54, %c0_25, %c0_26], %57 {strides = array<i32>} : memref<2x32x256xbf16, #tpu.memory_space<vmem>>, vector<1x32x256xbf16>,
    %c1_i32 = arith.constant 1 : i32
    %58 = arith.index_cast %c1_i32 : i32 to index
    %c0_27 = arith.constant 0 : index
    %c0_28 = arith.constant 0 : index
    %59 = vector.load %arg1[%58, %c0_27, %c0_28] : memref<2x32x256xf32, #tpu.memory_space<vmem>>, vector<1x32x256xf32>
    %60 = vector.shape_cast %59 : vector<1x32x256xf32> to vector<32x256xf32>
    %61 = arith.truncf %60 : vector<32x256xf32> to vector<32x256xbf16>
    %62 = arith.index_cast %c1_i32 : i32 to index
    %c0_29 = arith.constant 0 : index
    %c0_30 = arith.constant 0 : index
    %63 = vector.load %arg2[%62, %c0_29, %c0_30] : memref<2x32x256xf32, #tpu.memory_space<vmem>>, vector<1x32x256xf32>
    %64 = vector.shape_cast %63 : vector<1x32x256xf32> to vector<32x256xf32>
    %65 = arith.truncf %64 : vector<32x256xf32> to vector<32x256xbf16>
    %cst_31 = arith.constant dense<0.000000e+00> : vector<32x256xf32>
    %66 = tpu.matmul %0, %61, %cst_31 {dimension_numbers = #tpu.dot_dimension_numbers<[1], [0], [0], [1], [0, 0, 1, 1], [], []>} : vector<32x32xbf16>, vector<32x256xbf16>, vector<32x256xf32> -> vector<32x256xf32>
    %cst_32 = arith.constant dense<0.000000e+00> : vector<32x256xf32>
    %67 = tpu.matmul %1, %65, %cst_32 {dimension_numbers = #tpu.dot_dimension_numbers<[1], [0], [0], [1], [0, 0, 1, 1], [], []>} : vector<32x32xbf16>, vector<32x256xbf16>, vector<32x256xf32> -> vector<32x256xf32>
    %68 = arith.mulf %66, %66 : vector<32x256xf32>
    %cst_33 = arith.constant dense<0.000000e+00> : vector<32xf32>
    %69 = vector.multi_reduction <add>, %68, %cst_33 [1] : vector<32x256xf32> to vector<32xf32>
    %70 = vector.shape_cast %69 : vector<32xf32> to vector<32x1xf32>
    %71 = vector.broadcast %cst : f32 to vector<32x1xf32>
    %72 = arith.maximumf %70, %71 : vector<32x1xf32>
    %73 = math.rsqrt %72 : vector<32x1xf32>
    %74 = arith.mulf %73, %4 : vector<32x1xf32>
    %75 = arith.mulf %67, %67 : vector<32x256xf32>
    %cst_34 = arith.constant dense<0.000000e+00> : vector<32xf32>
    %76 = vector.multi_reduction <add>, %75, %cst_34 [1] : vector<32x256xf32> to vector<32xf32>
    %77 = vector.shape_cast %76 : vector<32xf32> to vector<32x1xf32>
    %78 = vector.broadcast %cst : f32 to vector<32x1xf32>
    %79 = arith.maximumf %77, %78 : vector<32x1xf32>
    %80 = math.rsqrt %79 : vector<32x1xf32>
    %81 = vector.broadcast %74 : vector<32x1xf32> to vector<32x256xf32>
    %82 = arith.mulf %66, %81 : vector<32x256xf32>
    %83 = arith.truncf %82 : vector<32x256xf32> to vector<32x256xbf16>
    %84 = vector.broadcast %80 : vector<32x1xf32> to vector<32x256xf32>
    %85 = arith.mulf %67, %84 : vector<32x256xf32>
    %86 = arith.truncf %85 : vector<32x256xf32> to vector<32x256xbf16>
    %cst_35 = arith.constant dense<0.000000e+00> : vector<32x32xf32>
    %87 = tpu.matmul %83, %86, %cst_35 {dimension_numbers = #tpu.dot_dimension_numbers<[1], [1], [0], [0], [0, 0, 1, 0], [], []>} : vector<32x256xbf16>, vector<32x256xbf16>, vector<32x32xf32> -> vector<32x32xf32>
    %88 = arith.addf %87, %5 : vector<32x32xf32>
    %cst_36 = arith.constant dense<0xFF800000> : vector<32xf32>
    %89 = vector.multi_reduction <maximumf>, %88, %cst_36 [1] : vector<32x32xf32> to vector<32xf32>
    %90 = vector.shape_cast %89 : vector<32xf32> to vector<32x1xf32>
    %91 = vector.broadcast %90 : vector<32x1xf32> to vector<32x32xf32>
    %92 = arith.subf %88, %91 : vector<32x32xf32>
    %93 = math.exp %92 : vector<32x32xf32>
    %cst_37 = arith.constant dense<0.000000e+00> : vector<32xf32>
    %94 = vector.multi_reduction <add>, %93, %cst_37 [1] : vector<32x32xf32> to vector<32xf32>
    %95 = vector.shape_cast %94 : vector<32xf32> to vector<32x1xf32>
    %96 = tpu.reciprocal %95 {approx = true} : vector<32x1xf32> -> vector<32x1xf32>
    %97 = vector.broadcast %96 : vector<32x1xf32> to vector<32x32xf32>
    %98 = arith.mulf %93, %97 : vector<32x32xf32>
    %99 = arith.truncf %98 : vector<32x32xf32> to vector<32x32xbf16>
    %cst_38 = arith.constant dense<0.000000e+00> : vector<32x32xf32>
    %100 = tpu.matmul %3, %99, %cst_38 {dimension_numbers = #tpu.dot_dimension_numbers<[1], [0], [0], [1], [0, 0, 1, 1], [], []>} : vector<32x32xbf16>, vector<32x32xbf16>, vector<32x32xf32> -> vector<32x32xf32>
    %101 = arith.truncf %100 : vector<32x32xf32> to vector<32x32xbf16>
    %cst_39 = arith.constant dense<0.000000e+00> : vector<32x256xf32>
    %102 = tpu.matmul %2, %65, %cst_39 {dimension_numbers = #tpu.dot_dimension_numbers<[1], [0], [0], [1], [0, 0, 1, 1], [], []>} : vector<32x32xbf16>, vector<32x256xbf16>, vector<32x256xf32> -> vector<32x256xf32>
    %103 = arith.truncf %102 : vector<32x256xf32> to vector<32x256xbf16>
    %cst_40 = arith.constant dense<0.000000e+00> : vector<32x256xf32>
    %104 = tpu.matmul %101, %103, %cst_40 {dimension_numbers = #tpu.dot_dimension_numbers<[1], [0], [0], [1], [0, 0, 1, 1], [], []>} : vector<32x32xbf16>, vector<32x256xbf16>, vector<32x256xf32> -> vector<32x256xf32>
    %105 = arith.truncf %104 : vector<32x256xf32> to vector<32x256xbf16>
    %106 = arith.index_cast %c1_i32 : i32 to index
    %c0_41 = arith.constant 0 : index
    %c0_42 = arith.constant 0 : index
    %107 = vector.load %arg9[%106, %c0_41, %c0_42] : memref<2x32x256xbf16, #tpu.memory_space<vmem>>, vector<1x32x256xbf16>
    %108 = vector.shape_cast %107 : vector<1x32x256xbf16> to vector<32x256xbf16>
    %109 = vector.shape_cast %105 : vector<32x256xbf16> to vector<1x32x256xbf16>
    tpu.vector_store %arg9[%106, %c0_41, %c0_42], %109 {strides = array<i32>} : memref<2x32x256xbf16, #tpu.memory_space<vmem>>, vector<1x32x256xbf16>,
    %c2_i32 = arith.constant 2 : i32
    return
  }
  func.func @transform_0(%arg0: i32) -> (i32, i32, i32) {
    %c0_i32 = arith.constant 0 : i32
    %c0_i32_0 = arith.constant 0 : i32
    %c0_i32_1 = arith.constant 0 : i32
    return %arg0, %c0_i32, %c0_i32_0 : i32, i32, i32
  }
  func.func @transform_1(%arg0: i32) -> (i32, i32, i32) {
    %c0_i32 = arith.constant 0 : i32
    %c0_i32_0 = arith.constant 0 : i32
    %c0_i32_1 = arith.constant 0 : i32
    return %arg0, %c0_i32, %c0_i32_0 : i32, i32, i32
  }
  func.func @transform_2(%arg0: i32) -> (i32, i32) {
    %c0_i32 = arith.constant 0 : i32
    %c0_i32_0 = arith.constant 0 : i32
    %c0_i32_1 = arith.constant 0 : i32
    return %c0_i32, %c0_i32_0 : i32, i32
  }
  func.func @transform_3(%arg0: i32) -> (i32, i32) {
    %c0_i32 = arith.constant 0 : i32
    %c0_i32_0 = arith.constant 0 : i32
    %c0_i32_1 = arith.constant 0 : i32
    return %c0_i32, %c0_i32_0 : i32, i32
  }
  func.func @transform_4(%arg0: i32) -> (i32, i32) {
    %c0_i32 = arith.constant 0 : i32
    %c0_i32_0 = arith.constant 0 : i32
    %c0_i32_1 = arith.constant 0 : i32
    return %c0_i32, %c0_i32_0 : i32, i32
  }
  func.func @transform_5(%arg0: i32) -> (i32, i32) {
    %c0_i32 = arith.constant 0 : i32
    %c0_i32_0 = arith.constant 0 : i32
    %c0_i32_1 = arith.constant 0 : i32
    return %c0_i32, %c0_i32_0 : i32, i32
  }
  func.func @transform_6(%arg0: i32) -> (i32, i32) {
    %c0_i32 = arith.constant 0 : i32
    %c0_i32_0 = arith.constant 0 : i32
    %c0_i32_1 = arith.constant 0 : i32
    return %c0_i32, %c0_i32_0 : i32, i32
  }
  func.func @transform_7(%arg0: i32) -> (i32, i32) {
    %c0_i32 = arith.constant 0 : i32
    %c0_i32_0 = arith.constant 0 : i32
    %c0_i32_1 = arith.constant 0 : i32
    return %c0_i32, %c0_i32_0 : i32, i32
  }
  func.func @transform_8(%arg0: i32) -> (i32, i32, i32) {
    %c0_i32 = arith.constant 0 : i32
    %c0_i32_0 = arith.constant 0 : i32
    %c0_i32_1 = arith.constant 0 : i32
    return %arg0, %c0_i32, %c0_i32_0 : i32, i32, i32
  }
}

</mosaic_0001>

<bundles_post_ra>
// kernel: tpu_custom_call.1
= control target key start
LH: loop header
LB: loop body
LE: loop exit
PB: predicated region body
PF: predicated region fallthrough
CT: control target
= control target key end

     0   :  { %13 = vsyncpa [#allocation3], 0  ;;  %s1998_s0 = inlined_call_operand.hbm [shape: f32[2,32,256], index: 0, kind: input, shape index: {}]   ;;  %s1999_s1 = inlined_call_operand.hbm [shape: f32[2,32,256], index: 1, kind: input, shape index: {}]   ;;  %s2000_s2 = inlined_call_operand.hbm [shape: bf16[32,32], index: 2, kind: input, shape index: {}]   ;;  %s2001_s3 = inlined_call_operand.hbm [shape: bf16[32,32], index: 3, kind: input, shape index: {}]   ;;  %s2002_s4 = inlined_call_operand.hbm [shape: bf16[32,32], index: 4, kind: input, shape index: {}]   ;;  %s2003_s5 = inlined_call_operand.hbm [shape: bf16[32,32], index: 5, kind: input, shape index: {}]   ;;  %s2004_s6 = inlined_call_operand.vmem [shape: f32[32,1], index: 6, kind: input, shape index: {}]   ;;  %s2005_s7 = inlined_call_operand.vmem [shape: f32[32,32], index: 7, kind: input, shape index: {}]   ;;  %s2006_s8 = inlined_call_operand.hbm [shape: bf16[2,32,256], index: 8, kind: output, shape index: {}]  }
   0x1   :  { %14 = vsyncpa [#allocation6], 0 }
   0x2   :  { %15 = vsyncpa [#allocation9], 0 }
   0x3   :  { %16 = vsyncpa [#allocation12], 0 }
   0x4   :  { %17 = vsyncpa [#allocation4], 0  ;;  %s1579_s27 = smov [#allocation5]  }
   0x5   :  { %s35_s28 = sshll.u32 %s1579_s27, 4  ;;  %s36_s28 = int_to_ptr.vmem [resolvable:$true] %s35_s28 }
   0x6   :  { %s1437_s29 = scalar_lea.vmem %s36_s28, 2048  ;;  %p1442_p1 = scmp.lt.s32.totalorder %s36_s28, %s36_s28 }
   0x7   :  { %p1438_p0 = scmp.ne.s32.totalorder %s36_s28, %s1437_s29  ;;  %p1443_p2 = scmp.lt.s32.totalorder %s1437_s29, %s1437_s29 }
   0x9   :  { %p1444_p3 = por %p1443_p2, %p1442_p1 }
   0xb   :  { %p1445_p4 = pnand %p1444_p3, %p1438_p0 }
   0xd   :  { %1448 = shalt.err (!%p1445_p4)
}
   0xe   :  { %s1580_s30 = smov 256   ;;  %s1581_s9 = smov 16  }
   0xf   :  { %41 = dma.hbm_to_vmem [thread:$0]  %s1999_s1, 2048, %s36_s28, [#allocation6], %s1580_s30, %s1580_s30, %s1581_s9  }
  0x10   :  { %s1582_s12 = smov [#allocation8]   ;;  %s1583_s14 = smov [#allocation2]  }
  0x11   :  { %s59_s13 = sshll.u32 %s1582_s12, 4  ;;  %s23_s15 = sshll.u32 %s1583_s14, 4  ;;  %s60_s13 = int_to_ptr.vmem [resolvable:$true] %s59_s13  ;;  %s24_s15 = int_to_ptr.vmem [resolvable:$true] %s23_s15 }
  0x12   :  { %s1457_s16 = scalar_lea.vmem %s60_s13, 256  ;;  %p1462_p6 = scmp.lt.s32.totalorder %s60_s13, %s60_s13 }
  0x13   :  { %p1458_p5 = scmp.ne.s32.totalorder %s60_s13, %s1457_s16  ;;  %p1463_p7 = scmp.lt.s32.totalorder %s1457_s16, %s1457_s16 }
  0x15   :  { %p1464_p8 = por %p1463_p7, %p1462_p6 }
  0x17   :  { %p1465_p9 = pnand %p1464_p8, %p1458_p5 }
  0x19   :  { %1468 = shalt.err (!%p1465_p9)
}
  0x1a   :  { %s1584_s17 = smov 64   ;;  %s1585_s18 = smov 4  }
  0x1b   :  { %65 = dma.hbm_to_vmem [thread:$0]  %s2001_s3, 256, %s60_s13, [#allocation9], %s1584_s17, %s1584_s17, %s1585_s18  }
  0x1c   :  { %s1477_s1 = scalar_lea.vmem %s24_s15, 2048  ;;  %p1482_p11 = scmp.lt.s32.totalorder %s24_s15, %s24_s15 }
  0x1d   :  { %p1478_p10 = scmp.ne.s32.totalorder %s24_s15, %s1477_s1  ;;  %p1483_p12 = scmp.lt.s32.totalorder %s1477_s1, %s1477_s1 }
  0x1f   :  { %p1484_p13 = por %p1483_p12, %p1482_p11 }
  0x21   :  { %p1485_p0 = pnand %p1484_p13, %p1478_p10 }
  0x23   :  { %1488 = shalt.err (!%p1485_p0)
}
  0x24   :  { %29 = dma.hbm_to_vmem [thread:$0]  %s1998_s0, 2048, %s24_s15, [#allocation3], %s1580_s30, %s1580_s30, %s1581_s9  }
  0x25   :  { %s1586_s23 = smov [#allocation7]   ;;  %s1587_s25 = smov [#allocation10]  }
  0x26   :  { %s47_s24 = sshll.u32 %s1586_s23, 4  ;;  %s71_s26 = sshll.u32 %s1587_s25, 4  ;;  %s48_s24 = int_to_ptr.vmem [resolvable:$true] %s47_s24  ;;  %s72_s26 = int_to_ptr.vmem [resolvable:$true] %s71_s26 }
  0x27   :  { %s1497_s27 = scalar_lea.vmem %s48_s24, 256  ;;  %p1502_p2 = scmp.lt.s32.totalorder %s48_s24, %s48_s24 }
  0x28   :  { %p1498_p1 = scmp.ne.s32.totalorder %s48_s24, %s1497_s27  ;;  %p1503_p3 = scmp.lt.s32.totalorder %s1497_s27, %s1497_s27 }
  0x2a   :  { %p1504_p4 = por %p1503_p3, %p1502_p2 }
  0x2c   :  { %p1505_p5 = pnand %p1504_p4, %p1498_p1 }
  0x2e   :  { %1508 = shalt.err (!%p1505_p5)
}
  0x2f   :  { %53 = dma.hbm_to_vmem [thread:$0]  %s2000_s2, 256, %s48_s24, [#allocation6], %s1584_s17, %s1584_s17, %s1585_s18  }
  0x30   :  { %s1517_s0 = scalar_lea.vmem %s72_s26, 256  ;;  %p1522_p7 = scmp.lt.s32.totalorder %s72_s26, %s72_s26 }
  0x31   :  { %p1518_p6 = scmp.ne.s32.totalorder %s72_s26, %s1517_s0  ;;  %p1523_p8 = scmp.lt.s32.totalorder %s1517_s0, %s1517_s0 }
  0x33   :  { %p1524_p9 = por %p1523_p8, %p1522_p7 }
  0x35   :  { %p1525_p10 = pnand %p1524_p9, %p1518_p6 }
  0x37   :  { %1528 = shalt.err (!%p1525_p10)
}
  0x38   :  { %77 = dma.hbm_to_vmem [thread:$0]  %s2002_s4, 256, %s72_s26, [#allocation9], %s1584_s17, %s1584_s17, %s1585_s18  }
  0x39   :  { %s1588_s9 = smov [#allocation11]  }
  0x3a   :  { %s83_s10 = sshll.u32 %s1588_s9, 4  ;;  %s84_s10 = int_to_ptr.vmem [resolvable:$true] %s83_s10 }
  0x3b   :  { %s1537_s11 = scalar_lea.vmem %s84_s10, 256  ;;  %p1542_p12 = scmp.lt.s32.totalorder %s84_s10, %s84_s10 }
  0x3c   :  { %p1538_p11 = scmp.ne.s32.totalorder %s84_s10, %s1537_s11  ;;  %p1543_p13 = scmp.lt.s32.totalorder %s1537_s11, %s1537_s11 }
  0x3e   :  { %p1544_p0 = por %p1543_p13, %p1542_p12 }
  0x40   :  { %p1545_p1 = pnand %p1544_p0, %p1538_p11 }
  0x42   :  { %1548 = shalt.err (!%p1545_p1)
}
  0x43   :  { %89 = dma.hbm_to_vmem [thread:$0]  %s2003_s5, 256, %s84_s10, [#allocation12], %s1584_s17, %s1584_s17, %s1585_s18  }
  0x44   :  { %1569 = dma.done.wait [#allocation3], 2048  }
  0x45   :  { %1570 = vsyncadd [#allocation3], 4294965248 }
  0x46   :  { %1571 = dma.done.wait [#allocation6], 2304  }
  0x47   :  { %1572 = vsyncadd [#allocation6], 4294964992 }
  0x48   :  { %1573 = dma.done.wait [#allocation9], 512  }
  0x49   :  { %1574 = vsyncadd [#allocation9], 4294966784 }
  0x4a   :  { %1575 = dma.done.wait [#allocation12], 256  }
  0x4b   :  { %1576 = vsyncadd [#allocation12], 4294967040  ;;  %v1589_v0 = vmov 0   ;;  %v142_v1 = vld [vmem:[#allocation2 + $0x28] sm:$0xff]  ;;  %v144_v2 = vld [vmem:[#allocation2 + $0x38] sm:$0xff]  ;;  %vm171_vm0 = vcmask 261120  }
  0x4c   :  { %210 = vmatprep.mubr.bf16.mxu0 %v1589_v0  ;;  %279 = vmatprep.mubr.bf16.mxu1 %v1589_v0  ;;  %v154_v3 = vld [vmem:[#allocation5 + $0x28] sm:$0xff]  ;;  %v148_v4 = vpack.c.bf16 %v144_v2, %v142_v1  ;;  %v156_v5 = vld [vmem:[#allocation5 + $0x38] sm:$0xff]  ;;  %v141_v6 = vld [vmem:[#allocation2 + $0x20] sm:$0xff] }
  0x4d   :  { %1355 = vset.pattern.permute.xlu0 %v1589_v0  ;;  %1356 = vset.pattern.permute.xlu1 %v1589_v0  ;;  %v143_v7 = vld [vmem:[#allocation2 + $0x30] sm:$0xff]  ;;  %v1672_v8 = vpack.c.bf16 %v156_v5, %v154_v3  ;;  %v153_v10 = vld [vmem:[#allocation5 + $0x20] sm:$0xff]  ;;  %v138_v12 = vld [vmem:[#allocation2 + $0x8] sm:$0xff] }
  0x4e   :  { %v147_v9 = vpack.c.bf16 %v143_v7, %v141_v6  ;;  %v155_v11 = vld [vmem:[#allocation5 + $0x30] sm:$0xff]  ;;  %190 = vmatprep.subr.bf16.mxu0 %v148_v4  ;;  %v140_v14 = vld [vmem:[#allocation2 + $0x18] sm:$0xff]  ;;  %v150_v15 = vld [vmem:[#allocation5 + $0x8] sm:$0xff] }
  0x4f   :  { %v1674_v13 = vpack.c.bf16 %v155_v11, %v153_v10  ;;  %v152_v16 = vld [vmem:[#allocation5 + $0x18] sm:$0xff]  ;;  %259 = vmatprep.subr.bf16.mxu1 %v1672_v8  ;;  %v146_v17 = vpack.c.bf16 %v140_v14, %v138_v12  ;;  %v137_v19 = vld [vmem:[#allocation2] sm:$0xff]  ;;  %v139_v20 = vld [vmem:[#allocation2 + $0x10] sm:$0xff] }
  0x50   :  { %191 = vmatpush1.bf16.msra.mxu0 %v147_v9  ;;  %v1677_v18 = vpack.c.bf16 %v152_v16, %v150_v15  ;;  %v149_v21 = vld [vmem:[#allocation5] sm:$0xff]  ;;  %v145_v22 = vpack.c.bf16 %v139_v20, %v137_v19  ;;  %v151_v23 = vld [vmem:[#allocation5 + $0x10] sm:$0xff]  ;;  %v1694_v27 = vld [vmem:[#allocation7 + $0x8] sm:$0xff]  }
  0x51   :  { %260 = vmatpush1.bf16.msra.mxu1 %v1674_v13  ;;  %192 = vmatprep.subr.bf16.mxu0 %v146_v17  ;;  %v1681_v24 = vpack.c.bf16 %v151_v23, %v149_v21  ;;  %v1683_v25 = vld [vmem:[#allocation7] sm:$0xff]   ;;  %v1685_v26 = vld [vmem:[#allocation8] sm:$0xff]   ;;  %v1696_v28 = vld [vmem:[#allocation8 + $0x8] sm:$0xff]  }
  0x52   :  { %261 = vmatprep.subr.bf16.mxu1 %v1677_v18  ;;  %v1765_v20 = vld [vmem:[%s2004_s6] sm:$0xff] }
  0x54   :  { %193 = vmatpush1.bf16.msra.mxu0 %v145_v22 }
  0x55   :  { %262 = vmatpush1.bf16.msra.mxu1 %v1681_v24 }
  0x57   :  { %1275 = vmatmul.mubr.msk.bf16.vlgmr.msra.gmra.mxu0 %vm171_vm0, %v1683_v25 }
  0x58   :  { %1279 = vmatmul.mubr.msk.bf16.vlgmr.msra.gmra.mxu1 %vm171_vm0, %v1685_v26  ;;  %220 = vmatprep.mubr.bf16.mxu0 %v1589_v0 }
  0x59   :  { %289 = vmatprep.mubr.bf16.mxu1 %v1589_v0 }
  0x5f   :  { %1276 = vmatmul.mubr.msk.bf16.gmra.mxu0 %vm171_vm0, %v1694_v27 }
  0x60   :  { %1280 = vmatmul.mubr.msk.bf16.gmra.mxu1 %vm171_vm0, %v1696_v28 }
 0x117   :  { %v1702_v29 = vpop.f32.mrf.mxu0 }
 0x118   :  { %v1704_v30 = vpop.f32.mrf.mxu1  ;;  %v300_v32 = vmul.f32 %v1702_v29, %v1702_v29 }
 0x119   :  { %v1706_v31 = vpop.f32.mrf.mxu0  ;;  %v332_v50 = vmul.f32 %v1704_v30, %v1704_v30 }
 0x11a   :  { %v301_v33 = vmul.f32 %v1706_v31, %v1706_v31  ;;  %v1712_v34 = vpop.f32.mrf.mxu1 }
 0x11b   :  { %v1714_v35 = vpop.f32.mrf.mxu0  ;;  %v333_v51 = vmul.f32 %v1712_v34, %v1712_v34 }
 0x11c   :  { %v1716_v36 = vpop.f32.mrf.mxu1  ;;  %v308_v37 = vadd.f32 %v301_v33, %v300_v32  ;;  %v302_v39 = vmul.f32 %v1714_v35, %v1714_v35 }
 0x11d   :  { %v1718_v38 = vpop.f32.mrf.mxu0  ;;  %v340_v63 = vadd.f32 %v333_v51, %v332_v50  ;;  %v334_v2 = vmul.f32 %v1716_v36, %v1716_v36  ;;  %v1783_v51 = vld [vmem:[%s2004_s6 + $0x18] sm:$0xff] }
 0x11e   :  { %v303_v40 = vmul.f32 %v1718_v38, %v1718_v38  ;;  %v1724_v41 = vpop.f32.mrf.mxu1  ;;  %309 = vadd.xlane.f32.xlu0 %v308_v37  ;;  %v1771_v37 = vld [vmem:[%s2004_s6 + $0x8] sm:$0xff] }
 0x11f   :  { %v1726_v42 = vpop.f32.mrf.mxu0  ;;  %v335_v3 = vmul.f32 %v1724_v41, %v1724_v41 }
 0x120   :  { %v1728_v43 = vpop.f32.mrf.mxu1  ;;  %v311_v44 = vadd.f32 %v303_v40, %v302_v39  ;;  %v304_v47 = vmul.f32 %v1726_v42, %v1726_v42 }
 0x121   :  { %v336_v45 = vmul.f32 %v1728_v43, %v1728_v43  ;;  %v1732_v46 = vpop.f32.mrf.mxu0  ;;  %v343_v5 = vadd.f32 %v335_v3, %v334_v2 }
 0x122   :  { %v305_v48 = vmul.f32 %v1732_v46, %v1732_v46  ;;  %v1738_v49 = vpop.f32.mrf.mxu1  ;;  %312 = vadd.xlane.f32.xlu0 %v311_v44 }
 0x123   :  { %v337_v52 = vmul.f32 %v1738_v49, %v1738_v49  ;;  %v1746_v53 = vpop.f32.mrf.mxu0 }
 0x124   :  { %v314_v54 = vadd.f32 %v305_v48, %v304_v47  ;;  %v1748_v55 = vpop.f32.mrf.mxu1  ;;  %v306_v58 = vmul.f32 %v1746_v53, %v1746_v53  ;;  %v1777_v47 = vld [vmem:[%s2004_s6 + $0x10] sm:$0xff] }
 0x125   :  { %v1750_v56 = vpop.f32.mrf.mxu0  ;;  %v346_v57 = vadd.f32 %v337_v52, %v336_v45  ;;  %v338_v60 = vmul.f32 %v1748_v55, %v1748_v55 }
 0x126   :  { %v307_v59 = vmul.f32 %v1750_v56, %v1750_v56  ;;  %315 = vadd.xlane.f32.xlu1 %v314_v54  ;;  %v297_v61 = vpop.f32.mrf.mxu1 }
 0x127   :  { %347 = vadd.xlane.f32.xlu0 %v346_v57  ;;  %v339_v62 = vmul.f32 %v297_v61, %v297_v61 }
 0x128   :  { %v317_v1 = vadd.f32 %v307_v59, %v306_v58 }
 0x129   :  { %v349_v4 = vadd.f32 %v339_v62, %v338_v60 }
 0x12a   :  { %318 = vadd.xlane.f32.xlu1 %v317_v1 }
 0x12b   :  { %341 = vadd.xlane.f32.xlu0 %v340_v63 }
 0x12e   :  { %350 = vadd.xlane.f32.xlu1 %v349_v4 }
 0x132   :  { %344 = vadd.xlane.f32.xlu1 %v343_v5 }
 0x1a7   :  { %v310_v6 = vpop.xlane.xlu0 %309 }
 0x1a8   :  { %v320_v7 = vmax.f32 %v310_v6, 1e-24 }
 0x1aa   :  { %1365 = vrsqrt.f32 %v320_v7 }
 0x1ab   :  { %v313_v9 = vpop.xlane.xlu0 %312 }
 0x1ac   :  { %v321_v10 = vmax.f32 %v313_v9, 1e-24 }
 0x1ae   :  { %1367 = vrsqrt.f32 %v321_v10 }
 0x1af   :  { %v316_v11 = vpop.xlane.xlu1 %315 }
 0x1b0   :  { %v348_v12 = vpop.xlane.xlu0 %347  ;;  %v322_v14 = vmax.f32 %v316_v11, 1e-24 }
 0x1b1   :  { %v354_v16 = vmax.f32 %v348_v12, 1e-24 }
 0x1b2   :  { %1369 = vrsqrt.f32 %v322_v14 }
 0x1b3   :  { %v319_v15 = vpop.xlane.xlu1 %318 }
 0x1b4   :  { %v323_v17 = vmax.f32 %v319_v15, 1e-24  ;;  %v342_v19 = vpop.xlane.xlu0 %341 }
 0x1b5   :  { %v352_v23 = vmax.f32 %v342_v19, 1e-24 }
 0x1b6   :  { %1371 = vrsqrt.f32 %v323_v17 }
 0x1b7   :  { %v1366_v21 = vpop.eup %1365  ;;  %v351_v22 = vpop.xlane.xlu1 %350  ;;  %1373 = vrsqrt.f32 %v354_v16 }
 0x1b8   :  { %v355_v32 = vmax.f32 %v351_v22, 1e-24  ;;  %v328_v33 = vmul.f32 %v1366_v21, %v1765_v20 }
 0x1ba   :  { %1375 = vrsqrt.f32 %v355_v32  ;;  %362 = vperm.xlu0 %1355, %v328_v33   ;;  %v1816_v32 = vld [vmem:[%s2005_s7 + $0x18] sm:$0xff] }
 0x1bb   :  { %v1368_v39 = vpop.eup %1367  ;;  %v345_v40 = vpop.xlane.xlu1 %344  ;;  %1377 = vrsqrt.f32 %v352_v23 }
 0x1bc   :  { %v353_v44 = vmax.f32 %v345_v40, 1e-24  ;;  %v329_v45 = vmul.f32 %v1368_v39, %v1771_v37  ;;  %v1823_v40 = vld [vmem:[%s2005_s7 + $0x8] sm:$0xff] }
 0x1be   :  { %1379 = vrsqrt.f32 %v353_v44  ;;  %367 = vperm.xlu1 %1356, %v329_v45  }
 0x1bf   :  { %v1370_v48 = vpop.eup %1369 }
 0x1c0   :  { %v330_v50 = vmul.f32 %v1370_v48, %v1777_v47 }
 0x1c2   :  { %372 = vperm.xlu1 %1356, %v330_v50  }
 0x1c3   :  { %v1372_v52 = vpop.eup %1371 }
 0x1c4   :  { %v331_v54 = vmul.f32 %v1372_v52, %v1783_v51  ;;  %v1374_v57 = vpop.eup %1373 }
 0x1c5   :  { %v397_v59 = vmul.f32 %v1374_v57, %v1738_v49  ;;  %v396_v62 = vmul.f32 %v1374_v57, %v1728_v43 }
 0x1c6   :  { %377 = vperm.xlu1 %1356, %v331_v54  }
 0x1c7   :  { %v1376_v58 = vpop.eup %1375 }
 0x1c8   :  { %v399_v60 = vmul.f32 %v1376_v58, %v297_v61  ;;  %v398_v63 = vmul.f32 %v1376_v58, %v1748_v55  ;;  %v1378_v1 = vpop.eup %1377 }
 0x1c9   :  { %v393_v5 = vmul.f32 %v1378_v1, %v1712_v34  ;;  %v392_v49 = vmul.f32 %v1378_v1, %v1704_v30 }
 0x1ca   :  { %v403_v2 = vpack.c.bf16 %v399_v60, %v397_v59  ;;  %v402_v3 = vpack.c.bf16 %v398_v63, %v396_v62 }
 0x1cb   :  { %v1380_v4 = vpop.eup %1379 }
 0x1cc   :  { %416 = vmatprep.subr.bf16.mxu0 %v403_v2  ;;  %v395_v6 = vmul.f32 %v1380_v4, %v1724_v41  ;;  %v394_v9 = vmul.f32 %v1380_v4, %v1716_v36 }
 0x1cd   :  { %417 = vmatpush1.bf16.xpose.msra.mxu0 %v402_v3 }
 0x1ce   :  { %v401_v7 = vpack.c.bf16 %v395_v6, %v393_v5  ;;  %v400_v61 = vpack.c.bf16 %v394_v9, %v392_v49 }
 0x1d0   :  { %418 = vmatprep.subr.bf16.mxu0 %v401_v7 }
 0x1d5   :  { %419 = vmatpush1.bf16.xpose.msra.mxu0 %v400_v61 }
 0x235   :  { %v363_v43 = vpop.permute.xlu0 %362 }
 0x236   :  { %v380_v10 = vmul.f32 %v363_v43, %v1702_v29  ;;  %v381_v11 = vmul.f32 %v363_v43, %v1706_v31 }
 0x239   :  { %v368_v55 = vpop.permute.xlu1 %367 }
 0x23a   :  { %v382_v12 = vmul.f32 %v368_v55, %v1714_v35  ;;  %v383_v34 = vmul.f32 %v368_v55, %v1718_v38 }
 0x23c   :  { %v388_v41 = vpack.c.bf16 %v382_v12, %v380_v10  ;;  %v389_v14 = vpack.c.bf16 %v383_v34, %v381_v11  ;;  %v1834_v34 = vld [vmem:[#allocation11] sm:$0xff]  }
 0x23d   :  { %v373_v15 = vpop.permute.xlu1 %372  ;;  %1329 = vmatprep.mubr.msk.bf16.mxu1 %vm171_vm0, %v1834_v34 }
 0x23e   :  { %436 = vmatprep.mubr.bf16.mxu0 %v389_v14  ;;  %v384_v30 = vmul.f32 %v373_v15, %v1726_v42  ;;  %v385_v16 = vmul.f32 %v373_v15, %v1732_v46  ;;  %v1805_v42 = vld [vmem:[%s2005_s7 + $0x10] sm:$0xff]  ;;  %v1810_v46 = vld [vmem:[%s2005_s7] sm:$0xff]  ;;  %s1590_s7 = smov [#allocation13]  }
 0x23f   :  { %437 = vmatmul.mubr.bf16.vlgmr.msra.gmra.mxu0 %v388_v41  ;;  %s1258_s25 = sshll.u32 %s1590_s7, 4  ;;  %s1259_s25 = int_to_ptr.vmem [resolvable:$true] %s1258_s25 }
 0x240   :  { %s1549_s26 = scalar_lea.vmem %s1259_s25, 1024  ;;  %p1554_p3 = scmp.lt.s32.totalorder %s1259_s25, %s1259_s25 }
 0x241   :  { %v378_v36 = vpop.permute.xlu1 %377  ;;  %p1550_p2 = scmp.ne.s32.totalorder %s1259_s25, %s1549_s26  ;;  %p1555_p4 = scmp.lt.s32.totalorder %s1549_s26, %s1549_s26 }
 0x242   :  { %v386_v17 = vmul.f32 %v378_v36, %v1746_v53  ;;  %v387_v29 = vmul.f32 %v378_v36, %v1750_v56 }
 0x243   :  { %p1556_p5 = por %p1555_p4, %p1554_p3 }
 0x244   :  { %v390_v19 = vpack.c.bf16 %v386_v17, %v384_v30  ;;  %v391_v31 = vpack.c.bf16 %v387_v29, %v385_v16 }
 0x245   :  { %p1557_p6 = pnand %p1556_p5, %p1550_p2 }
 0x246   :  { %444 = vmatprep.mubr.bf16.mxu0 %v391_v31 }
 0x247   :  { %445 = vmatmul.mubr.bf16.gmra.mxu0 %v390_v19 }
 0x248   :  { %677 = vmatprep.mubr.bf16.mxu0 %v1589_v0 }
 0x2ff   :  { %v438_v35 = vpop.f32.mrf.mxu0 }
 0x300   :  { %v439_v33 = vadd.f32 %v438_v35, %v1810_v46 }
 0x301   :  { %v440_v38 = vpop.f32.mrf.mxu0 }
 0x302   :  { %v453_v54 = vsel %vm171_vm0, %v439_v33, -inf }
 0x303   :  { %v441_v21 = vpop.f32.mrf.mxu0 }
 0x304   :  { %v442_v50 = vadd.f32 %v441_v21, %v1823_v40 }
 0x305   :  { %v443_v22 = vpop.f32.mrf.mxu0 }
 0x306   :  { %v456_v57 = vsel %vm171_vm0, %v442_v50, -inf }
 0x307   :  { %v446_v53 = vpop.f32.mrf.mxu0 }
 0x308   :  { %v447_v56 = vadd.f32 %v446_v53, %v1805_v42  ;;  %v1838_v53 = vld [vmem:[#allocation11 + $0x8] sm:$0xff]  }
 0x309   :  { %v448_v23 = vpop.f32.mrf.mxu0 }
 0x30a   :  { %v459_v39 = vsel %vm171_vm0, %v447_v56, -inf  ;;  %v734_v23 = vld [vmem:[#allocation2 + $0x78] sm:$0xff] }
 0x30b   :  { %v449_v44 = vpop.f32.mrf.mxu0  ;;  %460 = vmax.xlane.f32.xlu1 %v459_v39  ;;  %v731_v39 = vld [vmem:[#allocation2 + $0x60] sm:$0xff] }
 0x30c   :  { %v450_v45 = vadd.f32 %v449_v44, %v1816_v32  ;;  %v733_v44 = vld [vmem:[#allocation2 + $0x70] sm:$0xff] }
 0x30d   :  { %v451_v48 = vpop.f32.mrf.mxu0 }
 0x30e   :  { %v462_v52 = vsel %vm171_vm0, %v450_v45, -inf  ;;  %v730_v48 = vld [vmem:[#allocation2 + $0x58] sm:$0xff] }
 0x30f   :  { %463 = vmax.xlane.f32.xlu0 %v462_v52  ;;  %454 = vmax.xlane.f32.xlu1 %v453_v54  ;;  %v727_v54 = vld [vmem:[#allocation2 + $0x40] sm:$0xff] }
 0x313   :  { %457 = vmax.xlane.f32.xlu1 %v456_v57  ;;  %v729_v57 = vld [vmem:[#allocation2 + $0x50] sm:$0xff] }
 0x394   :  { %v461_v58 = vpop.xlane.xlu1 %460 }
 0x395   :  { %v467_v59 = vsub.f32 %v447_v56, %v461_v58  ;;  %v732_v56 = vld [vmem:[#allocation2 + $0x68] sm:$0xff] }
 0x397   :  { %v473_v60 = vmul.f32 1.442695, %v467_v59 }
 0x398   :  { %v464_v62 = vpop.xlane.xlu0 %463  ;;  %v455_v63 = vpop.xlane.xlu1 %454 }
 0x399   :  { %1381 = vpow2.f32 %v473_v60  ;;  %v468_v1 = vsub.f32 %v450_v45, %v464_v62  ;;  %v465_v2 = vsub.f32 %v439_v33, %v455_v63  ;;  %v738_v33 = vpack.c.bf16 %v734_v23, %v732_v56  ;;  %v728_v45 = vld [vmem:[#allocation2 + $0x48] sm:$0xff] }
 0x39a   :  { %v736_v52 = vpack.c.bf16 %v730_v48, %v728_v45 }
 0x39b   :  { %v475_v3 = vmul.f32 1.442695, %v468_v1  ;;  %v469_v4 = vmul.f32 1.442695, %v465_v2 }
 0x39c   :  { %v458_v5 = vpop.xlane.xlu1 %457 }
 0x39d   :  { %1383 = vpow2.f32 %v475_v3  ;;  %v466_v6 = vsub.f32 %v442_v50, %v458_v5  ;;  %v1846_v50 = vld [vmem:[#allocation10] sm:$0xff]  }
 0x39e   :  { %1385 = vpow2.f32 %v469_v4 }
 0x39f   :  { %v471_v7 = vmul.f32 1.442695, %v466_v6 }
 0x3a1   :  { %1387 = vpow2.f32 %v471_v7 }
 0x3a6   :  { %v1382_v9 = vpop.eup %1381 }
 0x3a7   :  { %v483_v49 = vsel %vm171_vm0, %v1382_v9, 0.0 }
 0x3a8   :  { %484 = vadd.xlane.f32.xlu1 %v483_v49  ;;  %v747_v49 = vld [vmem:[#allocation5 + $0x78] sm:$0xff] }
 0x3aa   :  { %v1384_v61 = vpop.eup %1383 }
 0x3ab   :  { %v1386_v43 = vpop.eup %1385  ;;  %v486_v55 = vsel %vm171_vm0, %v1384_v61, 0.0 }
 0x3ac   :  { %487 = vadd.xlane.f32.xlu1 %v486_v55  ;;  %v477_v10 = vsel %vm171_vm0, %v1386_v43, 0.0 }
 0x3ad   :  { %478 = vadd.xlane.f32.xlu0 %v477_v10 }
 0x3ae   :  { %v1388_v11 = vpop.eup %1387 }
 0x3af   :  { %v480_v12 = vsel %vm171_vm0, %v1388_v11, 0.0 }
 0x3b0   :  { %481 = vadd.xlane.f32.xlu1 %v480_v12  ;;  %v746_v12 = vld [vmem:[#allocation5 + $0x70] sm:$0xff] }
 0x431   :  { %v485_v41 = vpop.xlane.xlu1 %484 }
 0x432   :  { %1389 = vrcp.f32 %v485_v41 }
 0x435   :  { %v488_v14 = vpop.xlane.xlu1 %487 }
 0x436   :  { %v479_v15 = vpop.xlane.xlu0 %478  ;;  %1391 = vrcp.f32 %v488_v14 }
 0x437   :  { %1393 = vrcp.f32 %v479_v15  ;;  %v741_v15 = vld [vmem:[#allocation5 + $0x48] sm:$0xff] }
 0x439   :  { %v482_v36 = vpop.xlane.xlu1 %481 }
 0x43a   :  { %1395 = vrcp.f32 %v482_v36  ;;  %v743_v36 = vld [vmem:[#allocation5 + $0x58] sm:$0xff] }
 0x43f   :  { %v1390_v30 = vpop.eup %1389 }
 0x440   :  { %v495_v17 = vmul.f32 %v1390_v30, %v1382_v9  ;;  %v745_v9 = vld [vmem:[#allocation5 + $0x68] sm:$0xff] }
 0x441   :  { %v1870_v10 = vpack.c.bf16 %v747_v49, %v745_v9 }
 0x443   :  { %v1392_v16 = vpop.eup %1391 }
 0x444   :  { %v496_v29 = vmul.f32 %v1392_v16, %v1384_v61  ;;  %v1394_v19 = vpop.eup %1393 }
 0x445   :  { %v493_v38 = vmul.f32 %v1394_v19, %v1386_v43 }
 0x446   :  { %v498_v31 = vpack.c.bf16 %v496_v29, %v495_v17 }
 0x447   :  { %v1396_v35 = vpop.eup %1395 }
 0x448   :  { %1325 = vmatprep.subr.bf16.mxu1 %v498_v31  ;;  %v494_v21 = vmul.f32 %v1396_v35, %v1388_v11  ;;  %v744_v11 = vld [vmem:[#allocation5 + $0x60] sm:$0xff]  ;;  %v1883_v35 = vpack.c.bf16 %v743_v36, %v741_v15 }
 0x449   :  { %1326 = vmatpush3.bf16.msra.mxu1 %v498_v31  ;;  %v1878_v29 = vpack.c.bf16 %v746_v12, %v744_v11 }
 0x44a   :  { %v497_v22 = vpack.c.bf16 %v494_v21, %v493_v38  ;;  %v740_v38 = vld [vmem:[#allocation5 + $0x40] sm:$0xff]  ;;  %v742_v21 = vld [vmem:[#allocation5 + $0x50] sm:$0xff] }
 0x44c   :  { %1327 = vmatprep.subr.bf16.mxu1 %v497_v22 }
 0x44d   :  { %1328 = vmatpush3.bf16.msra.mxu1 %v497_v22 }
 0x44e   :  { %594 = vmatprep.subr.bf16.mxu1 %v1672_v8  ;;  %v737_v8 = vpack.c.bf16 %v733_v44, %v731_v39  ;;  %v1894_v39 = vpack.c.bf16 %v742_v21, %v740_v38 }
 0x450   :  { %1330 = vmatmul.mubr.msk.bf16.vlgmr.msra.gmra.mxu1 %vm171_vm0, %v1838_v53 }
 0x451   :  { %595 = vmatpush1.bf16.msra.mxu1 %v1674_v13  ;;  %614 = vmatprep.mubr.bf16.mxu1 %v1589_v0  ;;  %v735_v13 = vpack.c.bf16 %v729_v57, %v727_v54 }
 0x452   :  { %596 = vmatprep.subr.bf16.mxu1 %v1677_v18  ;;  %v1852_v18 = vld [vmem:[#allocation10 + $0x8] sm:$0xff]  }
 0x455   :  { %597 = vmatpush1.bf16.msra.mxu1 %v1681_v24 }
 0x456   :  { %764 = vmatprep.subr.bf16.mxu1 %v738_v33 }
 0x458   :  { %1287 = vmatmul.mubr.msk.bf16.vlgmr.msra.gmra.mxu1 %vm171_vm0, %v1846_v50 }
 0x459   :  { %624 = vmatprep.mubr.bf16.mxu1 %v1589_v0  ;;  %765 = vmatpush1.bf16.msra.mxu1 %v737_v8 }
 0x45a   :  { %766 = vmatprep.subr.bf16.mxu1 %v736_v52 }
 0x45d   :  { %767 = vmatpush1.bf16.msra.mxu1 %v735_v13 }
 0x460   :  { %1288 = vmatmul.mubr.msk.bf16.gmra.mxu1 %vm171_vm0, %v1852_v18 }
 0x461   :  { %784 = vmatprep.mubr.bf16.mxu1 %v1589_v0 }
 0x468   :  { %1295 = vmatmul.mubr.msk.bf16.vlgmr.msra.gmra.mxu1 %vm171_vm0, %v1683_v25 }
 0x469   :  { %794 = vmatprep.mubr.bf16.mxu1 %v1589_v0 }
 0x470   :  { %1296 = vmatmul.mubr.msk.bf16.gmra.mxu1 %vm171_vm0, %v1694_v27 }
 0x510   :  { %v1862_v24 = vpop.f32.mrf.mxu1 }
 0x512   :  { %v549_v58 = vpop.f32.mrf.mxu1 }
 0x514   :  { %v1332_v59 = vpop.f32.mrf.mxu1 }
 0x515   :  { %v565_v57 = vpack.c.bf16 %v1332_v59, %v1862_v24 }
 0x516   :  { %v552_v60 = vpop.f32.mrf.mxu1 }
 0x517   :  { %v564_v31 = vpack.c.bf16 %v552_v60, %v549_v58 }
 0x518   :  { %v616_v62 = vpop.f32.mrf.mxu1 }
 0x51a   :  { %v618_v63 = vpop.f32.mrf.mxu1 }
 0x51c   :  { %v620_v1 = vpop.f32.mrf.mxu1 }
 0x51d   :  { %v635_v14 = vpack.c.bf16 %v620_v1, %v616_v62 }
 0x51e   :  { %v622_v2 = vpop.f32.mrf.mxu1 }
 0x51f   :  { %v636_v27 = vpack.c.bf16 %v622_v2, %v618_v63 }
 0x520   :  { %v626_v3 = vpop.f32.mrf.mxu1 }
 0x522   :  { %v628_v4 = vpop.f32.mrf.mxu1 }
 0x524   :  { %v630_v5 = vpop.f32.mrf.mxu1 }
 0x525   :  { %v637_v25 = vpack.c.bf16 %v630_v5, %v626_v3 }
 0x526   :  { %v632_v6 = vpop.f32.mrf.mxu1 }
 0x527   :  { %v638_v7 = vpack.c.bf16 %v632_v6, %v628_v4 }
 0x528   :  { %v1864_v61 = vpop.f32.mrf.mxu1 }
 0x529   :  { %657 = vmatprep.subr.bf16.mxu0 %v638_v7  ;;  %v858_v43 = vmul.f32 %v1864_v61, %v1864_v61 }
 0x52a   :  { %658 = vmatpush1.bf16.msra.mxu0 %v637_v25  ;;  %v1868_v55 = vpop.f32.mrf.mxu1 }
 0x52b   :  { %659 = vmatprep.subr.bf16.mxu0 %v636_v27  ;;  %v859_v41 = vmul.f32 %v1868_v55, %v1868_v55 }
 0x52c   :  { %v1874_v30 = vpop.f32.mrf.mxu1 }
 0x52d   :  { %v860_v16 = vmul.f32 %v1874_v30, %v1874_v30  ;;  %v866_v17 = vadd.f32 %v859_v41, %v858_v43 }
 0x52e   :  { %660 = vmatpush1.bf16.msra.mxu0 %v635_v14  ;;  %v1880_v19 = vpop.f32.mrf.mxu1 }
 0x52f   :  { %817 = vmatprep.subr.bf16.mxu0 %v1870_v10  ;;  %v861_v22 = vmul.f32 %v1880_v19, %v1880_v19  ;;  %867 = vadd.xlane.f32.xlu0 %v866_v17 }
 0x530   :  { %v1887_v56 = vpop.f32.mrf.mxu1 }
 0x531   :  { %1289 = vmatmul.mubr.msk.bf16.vlgmr.msra.gmra.mxu0 %vm171_vm0, %v564_v31  ;;  %v862_v23 = vmul.f32 %v1887_v56, %v1887_v56  ;;  %v869_v33 = vadd.f32 %v861_v22, %v860_v16 }
 0x532   :  { %687 = vmatprep.mubr.bf16.mxu0 %v1589_v0  ;;  %818 = vmatpush1.bf16.msra.mxu0 %v1878_v29  ;;  %v1896_v44 = vpop.f32.mrf.mxu1 }
 0x533   :  { %819 = vmatprep.subr.bf16.mxu0 %v1883_v35  ;;  %v863_v45 = vmul.f32 %v1896_v44, %v1896_v44  ;;  %870 = vadd.xlane.f32.xlu1 %v869_v33 }
 0x534   :  { %v1901_v48 = vpop.f32.mrf.mxu1 }
 0x535   :  { %v864_v8 = vmul.f32 %v1901_v48, %v1901_v48  ;;  %v872_v52 = vadd.f32 %v863_v45, %v862_v23 }
 0x536   :  { %820 = vmatpush1.bf16.msra.mxu0 %v1894_v39  ;;  %v1906_v54 = vpop.f32.mrf.mxu1 }
 0x537   :  { %v865_v13 = vmul.f32 %v1906_v54, %v1906_v54  ;;  %873 = vadd.xlane.f32.xlu0 %v872_v52 }
 0x539   :  { %1290 = vmatmul.mubr.msk.bf16.gmra.mxu0 %vm171_vm0, %v565_v57  ;;  %v875_v58 = vadd.f32 %v865_v13, %v864_v8 }
 0x53a   :  { %837 = vmatprep.mubr.bf16.mxu0 %v1589_v0 }
 0x53b   :  { %876 = vadd.xlane.f32.xlu1 %v875_v58 }
 0x541   :  { %1297 = vmatmul.mubr.msk.bf16.vlgmr.msra.gmra.mxu0 %vm171_vm0, %v1685_v26 }
 0x542   :  { %847 = vmatprep.mubr.bf16.mxu0 %v1589_v0 }
 0x549   :  { %1298 = vmatmul.mubr.msk.bf16.gmra.mxu0 %vm171_vm0, %v1696_v28 }
 0x54a   :  { %1337 = vmatprep.mubr.msk.bf16.mxu0 %vm171_vm0, %v1834_v34 }
 0x5b8   :  { %v868_v11 = vpop.xlane.xlu0 %867 }
 0x5b9   :  { %v878_v33 = vmax.f32 %v868_v11, 1e-24 }
 0x5bc   :  { %v871_v41 = vpop.xlane.xlu1 %870 }
 0x5bd   :  { %v879_v38 = vmax.f32 %v871_v41, 1e-24 }
 0x5bf   :  { %1397 = vrsqrt.f32 %v879_v38 }
 0x5c0   :  { %v874_v45 = vpop.xlane.xlu0 %873  ;;  %1399 = vrsqrt.f32 %v878_v33 }
 0x5c1   :  { %v880_v57 = vmax.f32 %v874_v45, 1e-24 }
 0x5c3   :  { %1401 = vrsqrt.f32 %v880_v57 }
 0x5c4   :  { %v877_v8 = vpop.xlane.xlu1 %876 }
 0x5c5   :  { %v881_v58 = vmax.f32 %v877_v8, 1e-24 }
 0x5c7   :  { %1403 = vrsqrt.f32 %v881_v58 }
 0x5f1   :  { %v679_v24 = vpop.f32.mrf.mxu0 }
 0x5f3   :  { %v681_v59 = vpop.f32.mrf.mxu0 }
 0x5f4   :  { %v1309_v60 = vpack.c.bf16 %v681_v59, %v679_v24  ;;  %v1398_v24 = vpop.eup %1397 }
 0x5f5   :  { %v683_v62 = vpop.f32.mrf.mxu0  ;;  %v1400_v59 = vpop.eup %1399 }
 0x5f6   :  { %722 = vst [vmem:[#allocation13] sm:$0xff] %v1309_v60  ;;  %v887_v60 = vmul.f32 %v1398_v24, %v1771_v37 }
 0x5f7   :  { %v685_v63 = vpop.f32.mrf.mxu0 }
 0x5f8   :  { %v1310_v1 = vpack.c.bf16 %v685_v63, %v683_v62  ;;  %v1402_v62 = vpop.eup %1401  ;;  %v886_v63 = vmul.f32 %v1400_v59, %v1765_v20 }
 0x5f9   :  { %v689_v2 = vpop.f32.mrf.mxu0 }
 0x5fa   :  { %723 = vst [vmem:[#allocation13 + $0x8] sm:$0xff] %v1310_v1  ;;  %v1404_v1 = vpop.eup %1403 }
 0x5fb   :  { %v691_v3 = vpop.f32.mrf.mxu0 }
 0x5fc   :  { %v1311_v4 = vpack.c.bf16 %v691_v3, %v689_v2  ;;  %v888_v2 = vmul.f32 %v1402_v62, %v1777_v47  ;;  %v889_v3 = vmul.f32 %v1404_v1, %v1783_v51 }
 0x5fd   :  { %v693_v26 = vpop.f32.mrf.mxu0 }
 0x5fe   :  { %724 = vst [vmem:[#allocation13 + $0x10] sm:$0xff] %v1311_v4 }
 0x5ff   :  { %v695_v5 = vpop.f32.mrf.mxu0 }
 0x600   :  { %v1312_v6 = vpack.c.bf16 %v695_v5, %v693_v26 }
 0x601   :  { %v1920_v7 = vpop.f32.mrf.mxu0 }
 0x602   :  { %725 = vst [vmem:[#allocation13 + $0x18] sm:$0xff] %v1312_v6  ;;  %v890_v16 = vmul.f32 %v1920_v7, %v1920_v7 }
 0x603   :  { %v1922_v28 = vpop.f32.mrf.mxu0 }
 0x604   :  { %v891_v14 = vmul.f32 %v1922_v28, %v1922_v28 }
 0x605   :  { %v1924_v34 = vpop.f32.mrf.mxu0 }
 0x606   :  { %v898_v22 = vadd.f32 %v891_v14, %v890_v16  ;;  %v892_v52 = vmul.f32 %v1924_v34, %v1924_v34 }
 0x607   :  { %v1926_v25 = vpop.f32.mrf.mxu0 }
 0x608   :  { %v893_v21 = vmul.f32 %v1926_v25, %v1926_v25 }
 0x609   :  { %v1928_v9 = vpop.f32.mrf.mxu0 }
 0x60a   :  { %v894_v27 = vmul.f32 %v1928_v9, %v1928_v9  ;;  %v901_v13 = vadd.f32 %v893_v21, %v892_v52 }
 0x60b   :  { %v1930_v49 = vpop.f32.mrf.mxu0 }
 0x60c   :  { %v895_v43 = vmul.f32 %v1930_v49, %v1930_v49 }
 0x60d   :  { %v1936_v12 = vpop.f32.mrf.mxu0 }
 0x60e   :  { %v904_v15 = vadd.f32 %v895_v43, %v894_v27  ;;  %v896_v17 = vmul.f32 %v1936_v12, %v1936_v12 }
 0x60f   :  { %v855_v36 = vpop.f32.mrf.mxu0 }
 0x610   :  { %v897_v31 = vmul.f32 %v855_v36, %v855_v36  ;;  %905 = vadd.xlane.f32.xlu0 %v904_v15 }
 0x612   :  { %v907_v23 = vadd.f32 %v897_v31, %v896_v17 }
 0x614   :  { %899 = vadd.xlane.f32.xlu0 %v898_v22  ;;  %908 = vadd.xlane.f32.xlu1 %v907_v23 }
 0x618   :  { %902 = vadd.xlane.f32.xlu1 %v901_v13 }
 0x629   :  { %925 = vperm.xlu1 %1356, %v887_v60  }
 0x62a   :  { %920 = vperm.xlu0 %1355, %v886_v63  }
 0x62d   :  { %930 = vperm.xlu1 %1356, %v888_v2  }
 0x62e   :  { %935 = vperm.xlu0 %1355, %v889_v3  }
 0x699   :  { %v906_v4 = vpop.xlane.xlu0 %905 }
 0x69a   :  { %v912_v26 = vmax.f32 %v906_v4, 1e-24 }
 0x69c   :  { %1405 = vrsqrt.f32 %v912_v26 }
 0x69d   :  { %v900_v5 = vpop.xlane.xlu0 %899  ;;  %v909_v6 = vpop.xlane.xlu1 %908 }
 0x69e   :  { %v910_v27 = vmax.f32 %v900_v5, 1e-24  ;;  %v913_v43 = vmax.f32 %v909_v6, 1e-24 }
 0x6a0   :  { %1407 = vrsqrt.f32 %v913_v43 }
 0x6a1   :  { %v903_v37 = vpop.xlane.xlu1 %902  ;;  %1409 = vrsqrt.f32 %v910_v27 }
 0x6a2   :  { %v911_v20 = vmax.f32 %v903_v37, 1e-24 }
 0x6a4   :  { %1411 = vrsqrt.f32 %v911_v20 }
 0x6a5   :  { %v921_v11 = vpop.permute.xlu0 %920  ;;  %v926_v41 = vpop.permute.xlu1 %925 }
 0x6a6   :  { %v939_v47 = vmul.f32 %v921_v11, %v1868_v55  ;;  %v941_v51 = vmul.f32 %v926_v41, %v1880_v19  ;;  %v940_v13 = vmul.f32 %v926_v41, %v1874_v30 }
 0x6a8   :  { %v947_v14 = vpack.c.bf16 %v941_v51, %v939_v47 }
 0x6a9   :  { %v1406_v15 = vpop.eup %1405  ;;  %v936_v57 = vpop.permute.xlu0 %935 }
 0x6aa   :  { %994 = vmatprep.mubr.bf16.mxu1 %v947_v14  ;;  %v955_v31 = vmul.f32 %v1406_v15, %v1930_v49  ;;  %v954_v21 = vmul.f32 %v1406_v15, %v1928_v9  ;;  %v931_v9 = vpop.permute.xlu1 %930 }
 0x6ad   :  { %v1408_v16 = vpop.eup %1407 }
 0x6ae   :  { %v1410_v17 = vpop.eup %1409  ;;  %v957_v38 = vmul.f32 %v1408_v16, %v855_v36  ;;  %v956_v22 = vmul.f32 %v1408_v16, %v1936_v12  ;;  %v938_v12 = vmul.f32 %v921_v11, %v1864_v61 }
 0x6af   :  { %v951_v8 = vmul.f32 %v1410_v17, %v1922_v28  ;;  %v950_v49 = vmul.f32 %v1410_v17, %v1920_v7  ;;  %v945_v28 = vmul.f32 %v936_v57, %v1906_v54  ;;  %v942_v7 = vmul.f32 %v931_v9, %v1887_v56 }
 0x6b0   :  { %v961_v33 = vpack.c.bf16 %v957_v38, %v955_v31  ;;  %v960_v45 = vpack.c.bf16 %v956_v22, %v954_v21  ;;  %v946_v58 = vpack.c.bf16 %v940_v13, %v938_v12 }
 0x6b1   :  { %v1412_v23 = vpop.eup %1411 }
 0x6b2   :  { %v953_v55 = vmul.f32 %v1412_v23, %v1926_v25  ;;  %974 = vmatprep.subr.bf16.mxu1 %v961_v33  ;;  %v952_v52 = vmul.f32 %v1412_v23, %v1924_v34  ;;  %v943_v25 = vmul.f32 %v931_v9, %v1896_v44  ;;  %v944_v34 = vmul.f32 %v936_v57, %v1901_v48 }
 0x6b3   :  { %975 = vmatpush1.bf16.xpose.msra.mxu1 %v960_v45 }
 0x6b4   :  { %v959_v19 = vpack.c.bf16 %v953_v55, %v951_v8  ;;  %v958_v36 = vpack.c.bf16 %v952_v52, %v950_v49  ;;  %v949_v24 = vpack.c.bf16 %v945_v28, %v943_v25  ;;  %v948_v59 = vpack.c.bf16 %v944_v34, %v942_v7 }
 0x6b6   :  { %976 = vmatprep.subr.bf16.mxu1 %v959_v19 }
 0x6bb   :  { %977 = vmatpush1.bf16.xpose.msra.mxu1 %v958_v36 }
 0x6c2   :  { %995 = vmatmul.mubr.bf16.vlgmr.msra.gmra.mxu1 %v946_v58 }
 0x6c3   :  { %1002 = vmatprep.mubr.bf16.mxu1 %v949_v24 }
 0x6ca   :  { %1003 = vmatmul.mubr.bf16.gmra.mxu1 %v948_v59 }
 0x6cb   :  { %1203 = vmatprep.mubr.bf16.mxu1 %v1589_v0 }
 0x782   :  { %v996_v60 = vpop.f32.mrf.mxu1 }
 0x783   :  { %v997_v4 = vadd.f32 %v996_v60, %v1810_v46 }
 0x784   :  { %v998_v61 = vpop.f32.mrf.mxu1 }
 0x786   :  { %v999_v62 = vpop.f32.mrf.mxu1 }
 0x787   :  { %v1000_v1 = vadd.f32 %v999_v62, %v1823_v40 }
 0x788   :  { %v1001_v30 = vpop.f32.mrf.mxu1 }
 0x789   :  { %v1014_v5 = vsel %vm171_vm0, %v1000_v1, -inf }
 0x78a   :  { %v1004_v63 = vpop.f32.mrf.mxu1 }
 0x78b   :  { %v1005_v54 = vadd.f32 %v1004_v63, %v1805_v42  ;;  %v1011_v42 = vsel %vm171_vm0, %v997_v4, -inf }
 0x78c   :  { %v1006_v44 = vpop.f32.mrf.mxu1 }
 0x78d   :  { %v1017_v2 = vsel %vm171_vm0, %v1005_v54, -inf }
 0x78e   :  { %v1007_v3 = vpop.f32.mrf.mxu1  ;;  %1018 = vmax.xlane.f32.xlu1 %v1017_v2 }
 0x78f   :  { %v1008_v56 = vadd.f32 %v1007_v3, %v1816_v32 }
 0x790   :  { %v1009_v48 = vpop.f32.mrf.mxu1 }
 0x791   :  { %v1020_v26 = vsel %vm171_vm0, %v1008_v56, -inf }
 0x792   :  { %1021 = vmax.xlane.f32.xlu0 %v1020_v26  ;;  %1015 = vmax.xlane.f32.xlu1 %v1014_v5 }
 0x796   :  { %1012 = vmax.xlane.f32.xlu0 %v1011_v42 }
 0x817   :  { %v1019_v6 = vpop.xlane.xlu1 %1018 }
 0x818   :  { %v1025_v40 = vsub.f32 %v1005_v54, %v1019_v6 }
 0x81a   :  { %v1031_v27 = vmul.f32 1.442695, %v1025_v40 }
 0x81b   :  { %v1022_v43 = vpop.xlane.xlu0 %1021  ;;  %v1016_v37 = vpop.xlane.xlu1 %1015 }
 0x81c   :  { %1413 = vpow2.f32 %v1031_v27  ;;  %v1026_v20 = vsub.f32 %v1008_v56, %v1022_v43  ;;  %v1024_v32 = vsub.f32 %v1000_v1, %v1016_v37 }
 0x81e   :  { %v1033_v11 = vmul.f32 1.442695, %v1026_v20  ;;  %v1029_v41 = vmul.f32 1.442695, %v1024_v32 }
 0x81f   :  { %v1013_v46 = vpop.xlane.xlu0 %1012 }
 0x820   :  { %1415 = vpow2.f32 %v1033_v11  ;;  %v1023_v47 = vsub.f32 %v997_v4, %v1013_v46 }
 0x821   :  { %1417 = vpow2.f32 %v1029_v41 }
 0x822   :  { %v1027_v51 = vmul.f32 1.442695, %v1023_v47 }
 0x824   :  { %1419 = vpow2.f32 %v1027_v51 }
 0x829   :  { %v1414_v14 = vpop.eup %1413 }
 0x82a   :  { %v1041_v15 = vsel %vm171_vm0, %v1414_v14, 0.0 }
 0x82b   :  { %1042 = vadd.xlane.f32.xlu0 %v1041_v15 }
 0x82d   :  { %v1416_v16 = vpop.eup %1415 }
 0x82e   :  { %v1044_v17 = vsel %vm171_vm0, %v1416_v16, 0.0  ;;  %v1418_v31 = vpop.eup %1417 }
 0x82f   :  { %1045 = vadd.xlane.f32.xlu1 %v1044_v17  ;;  %v1038_v22 = vsel %vm171_vm0, %v1418_v31, 0.0 }
 0x831   :  { %v1420_v38 = vpop.eup %1419 }
 0x832   :  { %v1035_v21 = vsel %vm171_vm0, %v1420_v38, 0.0 }
 0x833   :  { %1036 = vadd.xlane.f32.xlu0 %v1035_v21  ;;  %1039 = vadd.xlane.f32.xlu1 %v1038_v22 }
 0x8b4   :  { %v1043_v23 = vpop.xlane.xlu0 %1042 }
 0x8b5   :  { %1421 = vrcp.f32 %v1043_v23 }
 0x8b8   :  { %v1046_v33 = vpop.xlane.xlu1 %1045 }
 0x8b9   :  { %1423 = vrcp.f32 %v1046_v33 }
 0x8bc   :  { %v1037_v45 = vpop.xlane.xlu0 %1036  ;;  %v1040_v8 = vpop.xlane.xlu1 %1039 }
 0x8bd   :  { %1425 = vrcp.f32 %v1037_v45 }
 0x8be   :  { %1427 = vrcp.f32 %v1040_v8 }
 0x8c2   :  { %v1422_v55 = vpop.eup %1421 }
 0x8c3   :  { %v1053_v52 = vmul.f32 %v1422_v55, %v1414_v14 }
 0x8c6   :  { %v1424_v19 = vpop.eup %1423 }
 0x8c7   :  { %v1054_v49 = vmul.f32 %v1424_v19, %v1416_v16 }
 0x8c9   :  { %v1056_v36 = vpack.c.bf16 %v1054_v49, %v1053_v52 }
 0x8ca   :  { %v1426_v57 = vpop.eup %1425 }
 0x8cb   :  { %v1428_v9 = vpop.eup %1427  ;;  %1333 = vmatprep.subr.bf16.mxu0 %v1056_v36  ;;  %v1051_v12 = vmul.f32 %v1426_v57, %v1420_v38 }
 0x8cc   :  { %1334 = vmatpush3.bf16.msra.mxu0 %v1056_v36  ;;  %v1052_v13 = vmul.f32 %v1428_v9, %v1418_v31 }
 0x8ce   :  { %v1055_v28 = vpack.c.bf16 %v1052_v13, %v1051_v12 }
 0x8d0   :  { %1335 = vmatprep.subr.bf16.mxu0 %v1055_v28 }
 0x8d1   :  { %1336 = vmatpush3.bf16.msra.mxu0 %v1055_v28 }
 0x8d2   :  { %1120 = vmatprep.subr.bf16.mxu0 %v1870_v10 }
 0x8d4   :  { %1338 = vmatmul.mubr.msk.bf16.vlgmr.msra.gmra.mxu0 %vm171_vm0, %v1838_v53 }
 0x8d5   :  { %1121 = vmatpush1.bf16.msra.mxu0 %v1878_v29  ;;  %1140 = vmatprep.mubr.bf16.mxu0 %v1589_v0 }
 0x8d6   :  { %1122 = vmatprep.subr.bf16.mxu0 %v1883_v35 }
 0x8d9   :  { %1123 = vmatpush1.bf16.msra.mxu0 %v1894_v39 }
 0x8dc   :  { %1301 = vmatmul.mubr.msk.bf16.vlgmr.msra.gmra.mxu0 %vm171_vm0, %v1846_v50 }
 0x8dd   :  { %1150 = vmatprep.mubr.bf16.mxu0 %v1589_v0 }
 0x8e4   :  { %1302 = vmatmul.mubr.msk.bf16.gmra.mxu0 %vm171_vm0, %v1852_v18 }
 0x994   :  { %v1339_v10 = vpop.f32.mrf.mxu0 }
 0x996   :  { %v1091_v25 = vpop.f32.mrf.mxu0 }
 0x998   :  { %v1340_v58 = vpop.f32.mrf.mxu0 }
 0x999   :  { %v1107_v63 = vpack.c.bf16 %v1340_v58, %v1339_v10 }
 0x99a   :  { %v1094_v53 = vpop.f32.mrf.mxu0 }
 0x99b   :  { %v1106_v18 = vpack.c.bf16 %v1094_v53, %v1091_v25 }
 0x99c   :  { %v1142_v24 = vpop.f32.mrf.mxu0 }
 0x99e   :  { %v1144_v29 = vpop.f32.mrf.mxu0 }
 0x9a0   :  { %v1146_v34 = vpop.f32.mrf.mxu0 }
 0x9a1   :  { %v1161_v30 = vpack.c.bf16 %v1146_v34, %v1142_v24 }
 0x9a2   :  { %v1148_v7 = vpop.f32.mrf.mxu0 }
 0x9a3   :  { %v1162_v50 = vpack.c.bf16 %v1148_v7, %v1144_v29 }
 0x9a4   :  { %v1152_v59 = vpop.f32.mrf.mxu0 }
 0x9a6   :  { %v1154_v35 = vpop.f32.mrf.mxu0 }
 0x9a8   :  { %v1156_v60 = vpop.f32.mrf.mxu0 }
 0x9a9   :  { %v1163_v62 = vpack.c.bf16 %v1156_v60, %v1152_v59 }
 0x9aa   :  { %v1158_v39 = vpop.f32.mrf.mxu0 }
 0x9ab   :  { %v1164_v61 = vpack.c.bf16 %v1158_v39, %v1154_v35 }
 0x9ad   :  { %1183 = vmatprep.subr.bf16.mxu1 %v1164_v61 }
 0x9ae   :  { %1184 = vmatpush1.bf16.msra.mxu1 %v1163_v62 }
 0x9af   :  { %1185 = vmatprep.subr.bf16.mxu1 %v1162_v50 }
 0x9b2   :  { %1186 = vmatpush1.bf16.msra.mxu1 %v1161_v30 }
 0x9b5   :  { %1303 = vmatmul.mubr.msk.bf16.vlgmr.msra.gmra.mxu1 %vm171_vm0, %v1106_v18 }
 0x9b6   :  { %1213 = vmatprep.mubr.bf16.mxu1 %v1589_v0 }
 0x9bd   :  { %1304 = vmatmul.mubr.msk.bf16.gmra.mxu1 %vm171_vm0, %v1107_v63 }
 0xa75   :  { %v1205_v54 = vpop.f32.mrf.mxu1 }
 0xa77   :  { %v1207_v44 = vpop.f32.mrf.mxu1 }
 0xa78   :  { %v1313_v1 = vpack.c.bf16 %v1207_v44, %v1205_v54 }
 0xa79   :  { %v1209_v2 = vpop.f32.mrf.mxu1 }
 0xa7a   :  { %1249 = vst [vmem:[#allocation13 + $0x20] sm:$0xff] %v1313_v1 }
 0xa7b   :  { %v1211_v3 = vpop.f32.mrf.mxu1 }
 0xa7c   :  { %v1314_v56 = vpack.c.bf16 %v1211_v3, %v1209_v2 }
 0xa7d   :  { %v1215_v48 = vpop.f32.mrf.mxu1 }
 0xa7e   :  { %1250 = vst [vmem:[#allocation13 + $0x28] sm:$0xff] %v1314_v56 }
 0xa7f   :  { %v1217_v4 = vpop.f32.mrf.mxu1 }
 0xa80   :  { %v1315_v26 = vpack.c.bf16 %v1217_v4, %v1215_v48 }
 0xa81   :  { %v1219_v5 = vpop.f32.mrf.mxu1 }
 0xa82   :  { %1251 = vst [vmem:[#allocation13 + $0x30] sm:$0xff] %v1315_v26 }
 0xa83   :  { %v1221_v42 = vpop.f32.mrf.mxu1 }
 0xa84   :  { %v1316_v0 = vpack.c.bf16 %v1221_v42, %v1219_v5 }
 0xa86   :  { %1252 = vst [vmem:[#allocation13 + $0x38] sm:$0xff] %v1316_v0 }
 0xa87   :  { %1560 = shalt.err (!%p1557_p6)
}
 0xa88   :  { %s1591_s27 = smov 128   ;;  %s1592_s3 = smov 8  }
 0xa89   :  { %1264 = dma.vmem_to_hbm [thread:$0]  %s1259_s25, 1024, %s2006_s8, [#allocation4], %s1591_s27, %s1591_s27, %s1592_s3  }
 0xa8a   :  { %1577 = dma.done.wait [#allocation4], 1024  }
 0xa8b   :  { %1578 = vsyncadd [#allocation4], 4294966272 }
 0xa8c   :  { %1268 = vsyncpa [#allocation3], 1 }
 0xa8d   :  { %1269 = vsyncpa [#allocation6], 1 }
 0xa8e   :  { %1270 = vsyncpa [#allocation9], 1 }
 0xa8f   :  { %1271 = vsyncpa [#allocation12], 1 }
 0xa90   :  { %1272 = vsyncpa [#allocation4], 1 }

</bundles_post_ra>
